<compile_context>
chip_gen: v5e
topology: v5e:2x2
jax: 0.10.0
libtpu: 0.0.40
codegen_flags: <defaults>
</compile_context>

<pallas_src>
import functools
from typing import Any, NamedTuple

import jax
import jax.numpy as jnp
from jax import lax
from jax.experimental import pallas as pl
from jax.experimental.pallas import tpu as pltpu

LN_EPS = 1e-5          # nn.LayerNorm default eps
_LANE = 128
_SUBLANE = 8


def _round_up(n, m):
    return ((n + m - 1) // m) * m


class FFNParams(NamedTuple):
    """One-time prepared (transposed, padded, casted) FFN parameters."""
    w1t: jax.Array      # (dm_p, dff_p) compute_dtype  == W1^T, zero padded
    b1: jax.Array       # (1, dff_p)    f32
    w2t: jax.Array      # (dff_p, dm_p) compute_dtype  == W2^T, zero padded
    b2: jax.Array       # (1, dm_p)     f32
    gbm: jax.Array      # (3, dm_p)     f32  rows = [gamma, beta, valid-col mask]
    d_model: int
    d_ff: int
    dm_p: int
    dff_p: int
    tk_ff: int          # d_ff chunk streamed per grid step
    nk: int             # number of d_ff chunks
    compute_dtype: Any


def prepare_ffn_params(w1, b1, w2, b2, gamma, beta, *, ff_chunk=2048,
                       compute_dtype=jnp.bfloat16):
    """One-time weight prep (hoisted out of the forward pass).

    w1: (d_ff, d_model) -- conv1 weight with the trailing k=1 dim squeezed.
    w2: (d_model, d_ff) -- conv2 weight likewise.
    """
    d_ff, d_model = w1.shape
    assert w2.shape == (d_model, d_ff)

    dm_p = _round_up(d_model, _LANE)
    nk = max(1, -(-d_ff // ff_chunk))                 # number of d_ff chunks
    tk_ff = _round_up(-(-d_ff // nk), _LANE)          # lane-aligned chunk size
    dff_p = tk_ff * nk

    f32 = jnp.float32
    w1t = jnp.pad(w1.astype(f32).T,
                  ((0, dm_p - d_model), (0, dff_p - d_ff))).astype(compute_dtype)
    w2t = jnp.pad(w2.astype(f32).T,
                  ((0, dff_p - d_ff), (0, dm_p - d_model))).astype(compute_dtype)
    b1r = jnp.pad(b1.astype(f32), (0, dff_p - d_ff)).reshape(1, dff_p)
    b2r = jnp.pad(b2.astype(f32), (0, dm_p - d_model)).reshape(1, dm_p)

    g = jnp.pad(gamma.astype(f32), (0, dm_p - d_model))
    bt = jnp.pad(beta.astype(f32), (0, dm_p - d_model))
    mask = (jnp.arange(dm_p) < d_model).astype(f32)   # precomputed valid cols
    gbm = jnp.stack([g, bt, mask], axis=0)            # (3, dm_p)

    return FFNParams(w1t=w1t, b1=b1r, w2t=w2t, b2=b2r, gbm=gbm,
                     d_model=d_model, d_ff=d_ff, dm_p=dm_p, dff_p=dff_p,
                     tk_ff=tk_ff, nk=nk, compute_dtype=compute_dtype)


def _ffn_kernel(x_ref, w1t_ref, b1_ref, w2t_ref, b2_ref, gbm_ref, o_ref,
                acc_ref, *, inv_d, eps, masked, compute_dtype):
    """Token tile (tm, dm_p) x one d_ff chunk; LN epilogue on the last chunk."""
    k = pl.program_id(1)

    @pl.when(k == 0)
    def _():
        acc_ref[...] = jnp.zeros_like(acc_ref)

    xv = x_ref[...]

    # conv1 (1x1) chunk + bias + ReLU -> (tm, tk_ff); bf16 MXU, f32 accumulate.
    h = jnp.dot(xv.astype(compute_dtype), w1t_ref[...],
                preferred_element_type=jnp.float32)
    h = jnp.maximum(h + b1_ref[...], 0.0)

    # conv2 (1x1) chunk, accumulated over d_ff chunks in f32 VMEM scratch.
    acc_ref[...] += jnp.dot(h.astype(compute_dtype), w2t_ref[...],
                            preferred_element_type=jnp.float32)

    # Epilogue on the last chunk: bias2 + residual + LayerNorm over d_model.
    @pl.when(k == pl.num_programs(1) - 1)
    def _():
        y = acc_ref[...] + b2_ref[...] + xv.astype(jnp.float32)
        # Padded feature columns of y are exactly zero (zero-padded x / W2^T /
        # b2), so the plain row-sum * 1/d_model is already the true mean.
        mean = jnp.sum(y, axis=-1, keepdims=True) * inv_d
        diff = y - mean
        if masked:
            # (y - mean) is nonzero in padded columns; drop them from the
            # variance using the precomputed mask row (no per-tile iota).
            diff = diff * gbm_ref[2:3, :]
        var = jnp.sum(diff * diff, axis=-1, keepdims=True) * inv_d
        y_hat = diff * lax.rsqrt(var + eps)
        o_ref[...] = (y_hat * gbm_ref[0:1, :] + gbm_ref[1:2, :]).astype(o_ref.dtype)


def _block_spec(shape, index_map, *, single_buffered=False):
    """BlockSpec; single-buffer grid-invariant operands when supported."""
    if single_buffered:
        try:
            return pl.BlockSpec(shape, index_map, pipeline_mode=pl.Buffered(1))
        except (AttributeError, TypeError, ValueError):
            pass  # older jax: fall back to default double buffering
    return pl.BlockSpec(shape, index_map)


def position_wise_ffn(x, params: FFNParams, *, tm=512):
    """Fused position-wise FFN: Conv1d(k=1) -> ReLU -> Conv1d(k=1) -> +res -> LN.

    x: (B, S, d_model); params from prepare_ffn_params (one-time prep).
    """
    B, S, d_model = x.shape
    assert d_model == params.d_model
    n_rows = B * S
    dm_p, tk_ff, nk = params.dm_p, params.tk_ff, params.nk

    tm_eff = min(tm, _round_up(n_rows, _SUBLANE))
    n_rows_p = _round_up(n_rows, tm_eff)
    padded = (n_rows_p != n_rows) or (dm_p != d_model)

    # Keep x in the caller dtype; only pad when the shape actually needs it.
    xf = x.reshape(n_rows, d_model)
    if padded:
        xf = jnp.pad(xf, ((0, n_rows_p - n_rows), (0, dm_p - d_model)))

    kernel = functools.partial(
        _ffn_kernel, inv_d=1.0 / float(d_model), eps=LN_EPS,
        masked=(dm_p != d_model), compute_dtype=params.compute_dtype)

    weights_invariant = (nk == 1)
    in_specs = [
        pl.BlockSpec((tm_eff, dm_p), lambda i, k: (i, 0)),                  # x tile
        _block_spec((dm_p, tk_ff), lambda i, k: (0, k),
                    single_buffered=weights_invariant),                     # W1^T chunk
        _block_spec((1, tk_ff), lambda i, k: (0, k),
                    single_buffered=weights_invariant),                     # b1 chunk
        _block_spec((tk_ff, dm_p), lambda i, k: (k, 0),
                    single_buffered=weights_invariant),                     # W2^T chunk
        _block_spec((1, dm_p), lambda i, k: (0, 0), single_buffered=True),  # b2
        _block_spec((3, dm_p), lambda i, k: (0, 0), single_buffered=True),  # gamma/beta/mask
    ]
    out_spec = pl.BlockSpec((tm_eff, dm_p), lambda i, k: (i, 0))

    # Footprint-derived VMEM limit (weights chunks + double-buffered x/out +
    # accumulator + h intermediate), clamped below physical capacity.
    x_item = xf.dtype.itemsize
    o_item = jnp.dtype(x.dtype).itemsize
    w_item = jnp.dtype(params.compute_dtype).itemsize
    w_bufs = 1 if weights_invariant else 2
    footprint = (
        2 * tm_eff * dm_p * x_item                     # x tiles (double-buffered)
        + 2 * tm_eff * dm_p * o_item                   # out tiles
        + w_bufs * 2 * dm_p * tk_ff * w_item           # W1^T + W2^T chunks
        + w_bufs * tk_ff * 4 + 4 * dm_p * 4            # b1 chunk, b2, gamma/beta/mask
        + tm_eff * dm_p * 4                            # f32 accumulator scratch
        + tm_eff * tk_ff * 4                           # h intermediate
    )
    try:
        phys_vmem = pltpu.get_tpu_info().vmem_capacity_bytes
    except Exception:
        phys_vmem = 64 * 1024 * 1024                   # conservative (v7x per-TC)
    vmem_limit = int(min(phys_vmem - (8 << 20),
                         max(footprint + (16 << 20), 32 << 20)))

    cost = pl.CostEstimate(
        flops=int(4 * n_rows * d_model * params.d_ff),
        transcendentals=0,
        bytes_accessed=int(n_rows * d_model * (x_item + o_item)
                           + 2 * dm_p * params.dff_p * w_item),
    )

    out = pl.pallas_call(
        kernel,
        out_shape=jax.ShapeDtypeStruct((n_rows_p, dm_p), x.dtype),
        grid_spec=pltpu.PrefetchScalarGridSpec(
            num_scalar_prefetch=0,
            grid=(n_rows_p // tm_eff, nk),
            in_specs=in_specs,
            out_specs=out_spec,
            scratch_shapes=[pltpu.VMEM((tm_eff, dm_p), jnp.float32)],
        ),
        compiler_params=pltpu.CompilerParams(
            # token axis parallel (megacore / v7x 2 TCs), d_ff axis is a reduction
            dimension_semantics=("parallel", "arbitrary"),
            vmem_limit_bytes=vmem_limit,
        ),
        cost_estimate=cost,
    )(xf, params.w1t, params.b1, params.w2t, params.b2, params.gbm)

    if padded:
        out = out[:n_rows, :d_model]
    return out.reshape(B, S, d_model)


def position_wise_ffn_from_raw(x, w1, b1, w2, b2, gamma, beta, *, tm=512,
                               ff_chunk=2048, compute_dtype=jnp.bfloat16):
    """Convenience wrapper: one-shot prep + forward (prefer prepping once)."""
    params = prepare_ffn_params(w1, b1, w2, b2, gamma, beta,
                                ff_chunk=ff_chunk, compute_dtype=compute_dtype)
    return position_wise_ffn(x, params, tm=tm)


# ----------------------------------------------------------------------------
# References for testing
# ----------------------------------------------------------------------------
def _mixed_ref(x, w1, b1, w2, b2, gamma, beta):
    """Mirrors the kernel's precision: bf16 MXU operands, f32 accumulate/LN."""
    bf = jnp.bfloat16
    h = jnp.maximum(
        jnp.einsum("bsd,fd->bsf", x.astype(bf), w1.astype(bf),
                   preferred_element_type=jnp.float32) + b1, 0.0)
    y = jnp.einsum("bsf,df->bsd", h.astype(bf), w2.astype(bf),
                   preferred_element_type=jnp.float32) + b2 + x.astype(jnp.float32)
    mu = jnp.mean(y, axis=-1, keepdims=True)
    var = jnp.mean((y - mu) ** 2, axis=-1, keepdims=True)
    return (y - mu) / jnp.sqrt(var + LN_EPS) * gamma + beta


def _f32_ref(x, w1, b1, w2, b2, gamma, beta):
    """Pure-f32 PyTorch-equivalent math."""
    h = jnp.maximum(jnp.einsum("bsd,fd->bsf", x, w1) + b1, 0.0)
    y = jnp.einsum("bsf,df->bsd", h, w2) + b2 + x
    mu = jnp.mean(y, axis=-1, keepdims=True)
    var = jnp.mean((y - mu) ** 2, axis=-1, keepdims=True)
    return (y - mu) / jnp.sqrt(var + LN_EPS) * gamma + beta


if __name__ == "__main__":
    def run_case(B, S, d_model, d_ff, ff_chunk, key):
        kx, kw1, kb1, kw2, kb2 = jax.random.split(key, 5)
        x = jax.random.normal(kx, (B, S, d_model), dtype=jnp.float32)
        # Conv weights (out, in, 1) with the trailing dim squeezed to (out, in).
        w1 = jax.random.normal(kw1, (d_ff, d_model), dtype=jnp.float32) * 0.1
        b1 = jax.random.normal(kb1, (d_ff,), dtype=jnp.float32) * 0.1
        w2 = jax.random.normal(kw2, (d_model, d_ff), dtype=jnp.float32) * 0.1
        b2 = jax.random.normal(kb2, (d_model,), dtype=jnp.float32) * 0.1
        gamma = jnp.ones((d_model,), dtype=jnp.float32)
        beta = jnp.zeros((d_model,), dtype=jnp.float32)

        params = prepare_ffn_params(w1, b1, w2, b2, gamma, beta, ff_chunk=ff_chunk)
        out = position_wise_ffn(x, params)
        jax.block_until_ready(out)
        assert out.shape == (B, S, d_model)

        ref_m = _mixed_ref(x, w1, b1, w2, b2, gamma, beta)
        assert jnp.allclose(out, ref_m, atol=3e-3, rtol=3e-3), "mismatch vs mixed ref"
        ref_f = _f32_ref(x, w1, b1, w2, b2, gamma, beta)
        assert jnp.allclose(out, ref_f, atol=5e-2, rtol=5e-2), "mismatch vs f32 ref"

    key = jax.random.PRNGKey(0)
    k1, k2 = jax.random.split(key)
    # Small module-consistent shapes; d_model=32 exercises the padded/masked path.
    run_case(B=2, S=8, d_model=32, d_ff=64, ff_chunk=2048, key=k1)
    # Lane-aligned shapes with forced d_ff streaming (nk=2): exercises the
    # no-pad fast path and the accumulated multi-chunk epilogue.
    run_case(B=2, S=8, d_model=128, d_ff=512, ff_chunk=256, key=k2)

    print("KERNEL_OK")
</pallas_src>

<mosaic_0001>
module attributes {stable_mosaic.version = 11 : i64} {
  func.func @_ffn_kernel(%arg0: i32, %arg1: i32, %arg2: memref<16x128xf32, #tpu.memory_space<vmem>>, %arg3: memref<128x128xbf16, #tpu.memory_space<vmem>>, %arg4: memref<1x128xf32, #tpu.memory_space<vmem>>, %arg5: memref<128x128xbf16, #tpu.memory_space<vmem>>, %arg6: memref<1x128xf32, #tpu.memory_space<vmem>>, %arg7: memref<3x128xf32, #tpu.memory_space<vmem>>, %arg8: memref<16x128xf32, #tpu.memory_space<vmem>>, %arg9: memref<16x128xf32, #tpu.memory_space<vmem>>) attributes {dimension_semantics = [#tpu.dimension_semantics<parallel>, #tpu.dimension_semantics<arbitrary>], iteration_bounds = array<i64: 1, 1>, scalar_prefetch = 0 : i64, scratch_operands = 1 : i64, tpu.core_type = #tpu.core_type<tc>, window_params = [{transform_indices = @transform_0, window_bounds = array<i64: 16, 128>}, {pipeline_mode = #tpu.pipeline_mode<synchronous>, transform_indices = @transform_1, window_bounds = array<i64: 128, 128>}, {pipeline_mode = #tpu.pipeline_mode<synchronous>, transform_indices = @transform_2, window_bounds = array<i64: 1, 128>}, {pipeline_mode = #tpu.pipeline_mode<synchronous>, transform_indices = @transform_3, window_bounds = array<i64: 128, 128>}, {pipeline_mode = #tpu.pipeline_mode<synchronous>, transform_indices = @transform_4, window_bounds = array<i64: 1, 128>}, {pipeline_mode = #tpu.pipeline_mode<synchronous>, transform_indices = @transform_5, window_bounds = array<i64: 3, 128>}, {transform_indices = @transform_6, window_bounds = array<i64: 16, 128>}]} {
    %c0_i32 = arith.constant 0 : i32
    %0 = arith.cmpi eq, %arg1, %c0_i32 : i32
    %1 = arith.extui %0 : i1 to i32
    %c0_i32_0 = arith.constant 0 : i32
    %2 = arith.cmpi ne, %1, %c0_i32_0 : i32
    scf.if %2 {
      %cst_16 = arith.constant 0.000000e+00 : f32
      %21 = vector.broadcast %cst_16 : f32 to vector<16x128xf32>
      %c0_17 = arith.constant 0 : index
      %c0_18 = arith.constant 0 : index
      %22 = vector.load %arg9[%c0_17, %c0_18] : memref<16x128xf32, #tpu.memory_space<vmem>>, vector<16x128xf32>
      tpu.vector_store %arg9[%c0_17, %c0_18], %21 {strides = array<i32>} : memref<16x128xf32, #tpu.memory_space<vmem>>, vector<16x128xf32>,
    } else {
    }
    %c0 = arith.constant 0 : index
    %c0_1 = arith.constant 0 : index
    %3 = vector.load %arg2[%c0, %c0_1] : memref<16x128xf32, #tpu.memory_space<vmem>>, vector<16x128xf32>
    %4 = arith.truncf %3 : vector<16x128xf32> to vector<16x128xbf16>
    %c0_2 = arith.constant 0 : index
    %c0_3 = arith.constant 0 : index
    %5 = vector.load %arg3[%c0_2, %c0_3] : memref<128x128xbf16, #tpu.memory_space<vmem>>, vector<128x128xbf16>
    %cst = arith.constant dense<0.000000e+00> : vector<16x128xf32>
    %6 = tpu.matmul %4, %5, %cst {dimension_numbers = #tpu.dot_dimension_numbers<[1], [0], [0], [1], [0, 0, 1, 1], [], []>} : vector<16x128xbf16>, vector<128x128xbf16>, vector<16x128xf32> -> vector<16x128xf32>
    %c0_4 = arith.constant 0 : index
    %c0_5 = arith.constant 0 : index
    %7 = vector.load %arg4[%c0_4, %c0_5] : memref<1x128xf32, #tpu.memory_space<vmem>>, vector<1x128xf32>
    %8 = vector.broadcast %7 : vector<1x128xf32> to vector<16x128xf32>
    %9 = arith.addf %6, %8 : vector<16x128xf32>
    %cst_6 = arith.constant 0.000000e+00 : f32
    %10 = vector.broadcast %cst_6 : f32 to vector<16x128xf32>
    %11 = arith.maximumf %9, %10 : vector<16x128xf32>
    %c0_7 = arith.constant 0 : index
    %c0_8 = arith.constant 0 : index
    %12 = vector.load %arg9[%c0_7, %c0_8] : memref<16x128xf32, #tpu.memory_space<vmem>>, vector<16x128xf32>
    %13 = arith.truncf %11 : vector<16x128xf32> to vector<16x128xbf16>
    %c0_9 = arith.constant 0 : index
    %c0_10 = arith.constant 0 : index
    %14 = vector.load %arg5[%c0_9, %c0_10] : memref<128x128xbf16, #tpu.memory_space<vmem>>, vector<128x128xbf16>
    %cst_11 = arith.constant dense<0.000000e+00> : vector<16x128xf32>
    %15 = tpu.matmul %13, %14, %cst_11 {dimension_numbers = #tpu.dot_dimension_numbers<[1], [0], [0], [1], [0, 0, 1, 1], [], []>} : vector<16x128xbf16>, vector<128x128xbf16>, vector<16x128xf32> -> vector<16x128xf32>
    %16 = arith.addf %12, %15 : vector<16x128xf32>
    %c0_12 = arith.constant 0 : index
    %c0_13 = arith.constant 0 : index
    %17 = vector.load %arg9[%c0_12, %c0_13] : memref<16x128xf32, #tpu.memory_space<vmem>>, vector<16x128xf32>
    tpu.vector_store %arg9[%c0_12, %c0_13], %16 {strides = array<i32>} : memref<16x128xf32, #tpu.memory_space<vmem>>, vector<16x128xf32>,
    %c0_i32_14 = arith.constant 0 : i32
    %18 = arith.cmpi eq, %arg1, %c0_i32_14 : i32
    %19 = arith.extui %18 : i1 to i32
    %c0_i32_15 = arith.constant 0 : i32
    %20 = arith.cmpi ne, %19, %c0_i32_15 : i32
    scf.if %20 {
      %c0_16 = arith.constant 0 : index
      %c0_17 = arith.constant 0 : index
      %21 = vector.load %arg9[%c0_16, %c0_17] : memref<16x128xf32, #tpu.memory_space<vmem>>, vector<16x128xf32>
      %c0_18 = arith.constant 0 : index
      %c0_19 = arith.constant 0 : index
      %22 = vector.load %arg6[%c0_18, %c0_19] : memref<1x128xf32, #tpu.memory_space<vmem>>, vector<1x128xf32>
      %23 = vector.broadcast %22 : vector<1x128xf32> to vector<16x128xf32>
      %24 = arith.addf %21, %23 : vector<16x128xf32>
      %25 = arith.addf %24, %3 : vector<16x128xf32>
      %cst_20 = arith.constant dense<0.000000e+00> : vector<16xf32>
      %26 = vector.multi_reduction <add>, %25, %cst_20 [1] : vector<16x128xf32> to vector<16xf32>
      %27 = vector.shape_cast %26 : vector<16xf32> to vector<16x1xf32>
      %cst_21 = arith.constant 3.125000e-02 : f32
      %28 = vector.broadcast %cst_21 : f32 to vector<16x1xf32>
      %29 = arith.mulf %27, %28 : vector<16x1xf32>
      %30 = vector.broadcast %29 : vector<16x1xf32> to vector<16x128xf32>
      %31 = arith.subf %25, %30 : vector<16x128xf32>
      %c2 = arith.constant 2 : index
      %c0_22 = arith.constant 0 : index
      %32 = vector.load %arg7[%c2, %c0_22] : memref<3x128xf32, #tpu.memory_space<vmem>>, vector<1x128xf32>
      %33 = vector.broadcast %32 : vector<1x128xf32> to vector<16x128xf32>
      %34 = arith.mulf %31, %33 : vector<16x128xf32>
      %35 = arith.mulf %34, %34 : vector<16x128xf32>
      %cst_23 = arith.constant dense<0.000000e+00> : vector<16xf32>
      %36 = vector.multi_reduction <add>, %35, %cst_23 [1] : vector<16x128xf32> to vector<16xf32>
      %37 = vector.shape_cast %36 : vector<16xf32> to vector<16x1xf32>
      %cst_24 = arith.constant 3.125000e-02 : f32
      %38 = vector.broadcast %cst_24 : f32 to vector<16x1xf32>
      %39 = arith.mulf %37, %38 : vector<16x1xf32>
      %cst_25 = arith.constant 9.99999974E-6 : f32
      %40 = vector.broadcast %cst_25 : f32 to vector<16x1xf32>
      %41 = arith.addf %39, %40 : vector<16x1xf32>
      %42 = math.rsqrt %41 : vector<16x1xf32>
      %43 = vector.broadcast %42 : vector<16x1xf32> to vector<16x128xf32>
      %44 = arith.mulf %34, %43 : vector<16x128xf32>
      %c0_26 = arith.constant 0 : index
      %c0_27 = arith.constant 0 : index
      %45 = vector.load %arg7[%c0_26, %c0_27] : memref<3x128xf32, #tpu.memory_space<vmem>>, vector<1x128xf32>
      %46 = vector.broadcast %45 : vector<1x128xf32> to vector<16x128xf32>
      %47 = arith.mulf %44, %46 : vector<16x128xf32>
      %c1 = arith.constant 1 : index
      %c0_28 = arith.constant 0 : index
      %48 = vector.load %arg7[%c1, %c0_28] : memref<3x128xf32, #tpu.memory_space<vmem>>, vector<1x128xf32>
      %49 = vector.broadcast %48 : vector<1x128xf32> to vector<16x128xf32>
      %50 = arith.addf %47, %49 : vector<16x128xf32>
      %c0_29 = arith.constant 0 : index
      %c0_30 = arith.constant 0 : index
      %51 = vector.load %arg8[%c0_29, %c0_30] : memref<16x128xf32, #tpu.memory_space<vmem>>, vector<16x128xf32>
      tpu.vector_store %arg8[%c0_29, %c0_30], %50 {strides = array<i32>} : memref<16x128xf32, #tpu.memory_space<vmem>>, vector<16x128xf32>,
    } else {
    }
    return
  }
  func.func @transform_0(%arg0: i32, %arg1: i32) -> (i32, i32) {
    %c0_i32 = arith.constant 0 : i32
    %c0_i32_0 = arith.constant 0 : i32
    return %arg0, %c0_i32 : i32, i32
  }
  func.func @transform_1(%arg0: i32, %arg1: i32) -> (i32, i32) {
    %c0_i32 = arith.constant 0 : i32
    %c0_i32_0 = arith.constant 0 : i32
    return %c0_i32, %arg1 : i32, i32
  }
  func.func @transform_2(%arg0: i32, %arg1: i32) -> (i32, i32) {
    %c0_i32 = arith.constant 0 : i32
    %c0_i32_0 = arith.constant 0 : i32
    return %c0_i32, %arg1 : i32, i32
  }
  func.func @transform_3(%arg0: i32, %arg1: i32) -> (i32, i32) {
    %c0_i32 = arith.constant 0 : i32
    %c0_i32_0 = arith.constant 0 : i32
    return %arg1, %c0_i32 : i32, i32
  }
  func.func @transform_4(%arg0: i32, %arg1: i32) -> (i32, i32) {
    %c0_i32 = arith.constant 0 : i32
    %c0_i32_0 = arith.constant 0 : i32
    %c0_i32_1 = arith.constant 0 : i32
    return %c0_i32, %c0_i32_0 : i32, i32
  }
  func.func @transform_5(%arg0: i32, %arg1: i32) -> (i32, i32) {
    %c0_i32 = arith.constant 0 : i32
    %c0_i32_0 = arith.constant 0 : i32
    %c0_i32_1 = arith.constant 0 : i32
    return %c0_i32, %c0_i32_0 : i32, i32
  }
  func.func @transform_6(%arg0: i32, %arg1: i32) -> (i32, i32) {
    %c0_i32 = arith.constant 0 : i32
    %c0_i32_0 = arith.constant 0 : i32
    return %arg0, %c0_i32 : i32, i32
  }
}

</mosaic_0001>

<bundles_post_ra>
// kernel: tpu_custom_call.1
= control target key start
LH: loop header
LB: loop body
LE: loop exit
PB: predicated region body
PF: predicated region fallthrough
CT: control target
= control target key end

     0   :  { %11 = vsyncpa [#allocation4], 0  ;;  %s693_s0 = inlined_call_operand.hbm [shape: f32[16,128], index: 0, kind: input, shape index: {}]   ;;  %s694_s1 = inlined_call_operand.hbm [shape: bf16[128,128], index: 1, kind: input, shape index: {}]   ;;  %s695_s2 = inlined_call_operand.hbm [shape: f32[1,128], index: 2, kind: input, shape index: {}]   ;;  %s696_s3 = inlined_call_operand.hbm [shape: bf16[128,128], index: 3, kind: input, shape index: {}]   ;;  %s697_s4 = inlined_call_operand.hbm [shape: f32[1,128], index: 4, kind: input, shape index: {}]   ;;  %s698_s5 = inlined_call_operand.vmem [shape: f32[3,128], index: 5, kind: input, shape index: {}]   ;;  %s699_s6 = inlined_call_operand.hbm [shape: f32[16,128], index: 6, kind: output, shape index: {}]  }
   0x1   :  { %12 = vsyncpa [#allocation7], 0 }
   0x2   :  { %13 = vsyncpa [#allocation10], 0  ;;  %s32_s23 = sshll.u32 %s694_s1, 4  ;;  %s33_s23 = int_to_ptr.hbm [resolvable:$true] %s32_s23 }
   0x3   :  { %14 = vsyncpa [#allocation5], 0  ;;  %s615_s24 = smov [#allocation6]   ;;  %s56_s28 = sshll.u32 %s696_s3, 4  ;;  %s57_s28 = int_to_ptr.hbm [resolvable:$true] %s56_s28 }
   0x4   :  { %s34_s25 = sshll.u32 %s615_s24, 4  ;;  %s616_s29 = smov 64   ;;  %s35_s25 = int_to_ptr.vmem [resolvable:$true] %s34_s25 }
   0x5   :  { %s617_s30 = smov 4   ;;  %s618_s7 = smov [#allocation9]  }
   0x6   :  { %40 = dma.hbm_to_vmem [thread:$0]  %s33_s23, 1024, %s35_s25, [#allocation7], %s616_s29, %s616_s29, %s617_s30  }
   0x7   :  { %s58_s8 = sshll.u32 %s618_s7, 4  ;;  %s19_s11 = sshll.u32 %s693_s0, 4  ;;  %s59_s8 = int_to_ptr.vmem [resolvable:$true] %s58_s8  ;;  %s20_s11 = int_to_ptr.hbm [resolvable:$true] %s19_s11 }
   0x8   :  { %64 = dma.hbm_to_vmem [thread:$0]  %s57_s28, 1024, %s59_s8, [#allocation10], %s616_s29, %s616_s29, %s617_s30  }
   0x9   :  { %s619_s1 = smov [#allocation3]   ;;  %s46_s3 = sshll.u32 %s695_s2, 4  ;;  %s47_s3 = int_to_ptr.hbm [resolvable:$true] %s46_s3 }
   0xa   :  { %s21_s12 = sshll.u32 %s619_s1, 4  ;;  %s620_s15 = smov 128   ;;  %s22_s12 = int_to_ptr.vmem [resolvable:$true] %s21_s12 }
   0xb   :  { %s621_s16 = smov 8   ;;  %s622_s17 = smov [#allocation8]  }
   0xc   :  { %27 = dma.hbm_to_vmem [thread:$0]  %s20_s11, 256, %s22_s12, [#allocation4], %s620_s15, %s620_s15, %s621_s16  }
   0xd   :  { %s48_s18 = sshll.u32 %s622_s17, 4  ;;  %s70_s20 = sshll.u32 %s697_s4, 4  ;;  %s49_s18 = int_to_ptr.vmem [resolvable:$true] %s48_s18  ;;  %s71_s20 = int_to_ptr.hbm [resolvable:$true] %s70_s20 }
   0xe   :  { %51 = dma.hbm_to_vmem [thread:$0]  %s47_s3, 16, %s49_s18, [#allocation7]  }
   0xf   :  { %s623_s21 = smov [#allocation11]  }
  0x10   :  { %s72_s22 = sshll.u32 %s623_s21, 4  ;;  %s73_s22 = int_to_ptr.vmem [resolvable:$true] %s72_s22 }
  0x11   :  { %75 = dma.hbm_to_vmem [thread:$0]  %s71_s20, 16, %s73_s22, [#allocation10]  }
  0x12   :  { %607 = dma.done.wait [#allocation4], 256  }
  0x13   :  { %608 = vsyncadd [#allocation4], 4294967040 }
  0x14   :  { %609 = dma.done.wait [#allocation7], 1040  }
  0x15   :  { %610 = vsyncadd [#allocation7], 4294966256 }
  0x16   :  { %611 = dma.done.wait [#allocation10], 1040  }
  0x17   :  { %612 = vsyncadd [#allocation10], 4294966256  ;;  %v435_v0 = vld [vmem:[#allocation6 + $0x38] sm:$0xff]  ;;  %v434_v1 = vld [vmem:[#allocation6 + $0x30] sm:$0xff]  ;;  %s624_s27 = smov [#allocation12]   ;;  %s349_s7 = sshll.u32 %s699_s6, 4  ;;  %s350_s7 = int_to_ptr.hbm [resolvable:$true] %s349_s7 }
  0x18   :  { %175 = vmatpush.bf16.msra.mxu0 %v435_v0  ;;  %v443_v2 = vld [vmem:[#allocation9 + $0x38] sm:$0xff]  ;;  %v442_v3 = vld [vmem:[#allocation9 + $0x30] sm:$0xff]  ;;  %v433_v4 = vld [vmem:[#allocation6 + $0x28] sm:$0xff]  ;;  %s347_s28 = sshll.u32 %s624_s27, 4  ;;  %s348_s28 = int_to_ptr.vmem [resolvable:$true] %s347_s28 }
  0x19   :  { %258 = vmatpush.bf16.msra.mxu1 %v443_v2  ;;  %v441_v5 = vld [vmem:[#allocation9 + $0x28] sm:$0xff]  ;;  %v432_v6 = vld [vmem:[#allocation6 + $0x20] sm:$0xff]  ;;  %v431_v8 = vld [vmem:[#allocation6 + $0x18] sm:$0xff] }
  0x1a   :  { %v440_v7 = vld [vmem:[#allocation9 + $0x20] sm:$0xff]  ;;  %v430_v9 = vld [vmem:[#allocation6 + $0x10] sm:$0xff]  ;;  %v105_v13 = vld [vmem:[#allocation3 + $0x8] sm:$0xff] }
  0x1b   :  { %v429_v10 = vld [vmem:[#allocation6 + $0x8] sm:$0xff]  ;;  %v428_v11 = vld [vmem:[#allocation6] sm:$0xff]  ;;  %v104_v12 = vld [vmem:[#allocation3] sm:$0xff] }
  0x1c   :  { %176 = vmatpush.bf16.msra.mxu0 %v434_v1  ;;  %v106_v14 = vpack.c.bf16 %v105_v13, %v104_v12  ;;  %v439_v15 = vld [vmem:[#allocation9 + $0x18] sm:$0xff]  ;;  %v438_v16 = vld [vmem:[#allocation9 + $0x10] sm:$0xff]  ;;  %v437_v17 = vld [vmem:[#allocation9 + $0x8] sm:$0xff] }
  0x1d   :  { %259 = vmatpush.bf16.msra.mxu1 %v442_v3  ;;  %v436_v18 = vld [vmem:[#allocation9] sm:$0xff]  ;;  %v454_v20 = vld [vmem:[#allocation8] ss:$0 sm:$0xff]  ;;  %v456_v36 = vld [vmem:[%s698_s5 + $0x2] ss:$0 sm:$0xff] }
  0x1e   :  { %v455_v27 = vld [vmem:[#allocation11] ss:$0 sm:$0xff]  ;;  %v457_v59 = vld [vmem:[%s698_s5] ss:$0 sm:$0xff]  ;;  %v458_v63 = vld [vmem:[%s698_s5 + $0x1] ss:$0 sm:$0xff] }
  0x20   :  { %177 = vmatpush.bf16.msra.mxu0 %v433_v4 }
  0x21   :  { %260 = vmatpush.bf16.msra.mxu1 %v441_v5 }
  0x24   :  { %178 = vmatpush.bf16.msra.mxu0 %v432_v6 }
  0x25   :  { %261 = vmatpush.bf16.msra.mxu1 %v440_v7 }
  0x28   :  { %179 = vmatpush.bf16.msra.mxu0 %v431_v8 }
  0x29   :  { %262 = vmatpush.bf16.msra.mxu1 %v439_v15 }
  0x2c   :  { %180 = vmatpush.bf16.msra.mxu0 %v430_v9 }
  0x2d   :  { %263 = vmatpush.bf16.msra.mxu1 %v438_v16 }
  0x30   :  { %181 = vmatpush.bf16.msra.mxu0 %v429_v10 }
  0x31   :  { %264 = vmatpush.bf16.msra.mxu1 %v437_v17 }
  0x34   :  { %182 = vmatpush.bf16.msra.mxu0 %v428_v11 }
  0x35   :  { %265 = vmatpush.bf16.msra.mxu1 %v436_v18 }
  0x37   :  { %183 = vmatmul.bf16.vlgmr.msra.gmra.mxu0 %v106_v14 }
  0xb4   :  { %v184_v19 = vpop.f32.mrf.mxu0 }
  0xb5   :  { %v185_v21 = vadd.f32 %v454_v20, %v184_v19 }
  0xb7   :  { %v189_v24 = vmax.f32 %v185_v21, 0.0 }
  0xbc   :  { %v186_v22 = vpop.f32.mrf.mxu0 }
  0xbd   :  { %v187_v23 = vadd.f32 %v454_v20, %v186_v22 }
  0xbf   :  { %v190_v25 = vmax.f32 %v187_v23, 0.0 }
  0xc1   :  { %v193_v26 = vpack.c.bf16 %v190_v25, %v189_v24 }
  0xc3   :  { %266 = vmatmul.bf16.vlgmr.msra.gmra.mxu1 %v193_v26 }
 0x140   :  { %v267_v28 = vpop.f32.mrf.mxu1 }
 0x141   :  { %v285_v29 = vadd.f32 %v455_v27, %v267_v28 }
 0x143   :  { %v287_v30 = vadd.f32 %v285_v29, %v104_v12 }
 0x145   :  { %289 = vadd.xlane.f32.xlu0 %v287_v30 }
 0x148   :  { %v269_v31 = vpop.f32.mrf.mxu1 }
 0x149   :  { %v286_v32 = vadd.f32 %v455_v27, %v269_v31 }
 0x14b   :  { %v288_v33 = vadd.f32 %v286_v32, %v105_v13 }
 0x14d   :  { %291 = vadd.xlane.f32.xlu0 %v288_v33 }
 0x1b8   :  { %v290_v34 = vpop.xlane.xlu0 %289 }
 0x1b9   :  { %v293_v35 = vmul.f32 0.03125, %v290_v34 }
 0x1bb   :  { %v295_v37 = vsub.f32 %v287_v30, %v293_v35 }
 0x1bd   :  { %v299_v38 = vmul.f32 %v456_v36, %v295_v37 }
 0x1bf   :  { %v301_v39 = vmul.f32 %v299_v38, %v299_v38 }
 0x1c0   :  { %v292_v40 = vpop.xlane.xlu0 %291 }
 0x1c1   :  { %v294_v41 = vmul.f32 0.03125, %v292_v40  ;;  %303 = vadd.xlane.f32.xlu1 %v301_v39 }
 0x1c3   :  { %v296_v42 = vsub.f32 %v288_v33, %v294_v41 }
 0x1c5   :  { %v300_v43 = vmul.f32 %v456_v36, %v296_v42 }
 0x1c7   :  { %v302_v44 = vmul.f32 %v300_v43, %v300_v43 }
 0x1c9   :  { %305 = vadd.xlane.f32.xlu1 %v302_v44 }
 0x234   :  { %v304_v45 = vpop.xlane.xlu1 %303 }
 0x235   :  { %v307_v46 = vmul.f32 0.03125, %v304_v45 }
 0x237   :  { %v309_v47 = vadd.f32 1e-05, %v307_v46 }
 0x239   :  { %459 = vrsqrt.f32 %v309_v47  ;;  %vm317_vm1 = vweird.f32 %v309_v47 }
 0x23c   :  { %v306_v48 = vpop.xlane.xlu1 %305 }
 0x23d   :  { %v308_v49 = vmul.f32 0.03125, %v306_v48 }
 0x23f   :  { %v460_v50 = vpop.eup %459  ;;  %v310_v51 = vadd.f32 1e-05, %v308_v49 }
 0x240   :  { %v312_v52 = vmul.f32 %v460_v50, %v309_v47  ;;  %vm318_vm0 = vweird.f32 %v460_v50 }
 0x241   :  { %461 = vrsqrt.f32 %v310_v51  ;;  %vm319_vm2 = vmor %vm317_vm1, %vm318_vm0  ;;  %vm327_vm4 = vweird.f32 %v310_v51 }
 0x242   :  { %v313_v53 = vmul.f32 %v460_v50, %v312_v52 }
 0x244   :  { %v314_v54 = vmul.f32 0.5, %v313_v53 }
 0x246   :  { %v315_v55 = vsub.f32 1.5, %v314_v54 }
 0x247   :  { %v462_v56 = vpop.eup %461 }
 0x248   :  { %v316_v57 = vmul.f32 %v460_v50, %v315_v55  ;;  %v322_v58 = vmul.f32 %v462_v56, %v310_v51  ;;  %vm328_vm3 = vweird.f32 %v462_v56 }
 0x249   :  { %vm329_vm5 = vmor %vm327_vm4, %vm328_vm3 }
 0x24a   :  { %v320_v60 = vsel %vm319_vm2, %v460_v50, %v316_v57  ;;  %v323_v61 = vmul.f32 %v462_v56, %v322_v58 }
 0x24b   :  { %v331_v62 = vmul.f32 %v320_v60, %v299_v38 }
 0x24c   :  { %v324_v0 = vmul.f32 0.5, %v323_v61 }
 0x24d   :  { %v335_v1 = vmul.f32 %v457_v59, %v331_v62 }
 0x24e   :  { %v325_v2 = vsub.f32 1.5, %v324_v0 }
 0x24f   :  { %v339_v3 = vadd.f32 %v458_v63, %v335_v1 }
 0x250   :  { %v326_v4 = vmul.f32 %v462_v56, %v325_v2 }
 0x251   :  { %341 = vst [vmem:[#allocation12] sm:$0xff] %v339_v3 }
 0x252   :  { %v330_v5 = vsel %vm329_vm5, %v462_v56, %v326_v4 }
 0x253   :  { %v332_v6 = vmul.f32 %v330_v5, %v300_v43 }
 0x255   :  { %v336_v7 = vmul.f32 %v457_v59, %v332_v6 }
 0x257   :  { %v340_v8 = vadd.f32 %v458_v63, %v336_v7 }
 0x259   :  { %342 = vst [vmem:[#allocation12 + $0x8] sm:$0xff] %v340_v8 }
 0x25a   :  { %355 = dma.vmem_to_hbm [thread:$0]  %s348_s28, 256, %s350_s7, [#allocation5], %s620_s15, %s620_s15, %s621_s16  }
 0x25b   :  { %613 = dma.done.wait [#allocation5], 256  }
 0x25c   :  { %614 = vsyncadd [#allocation5], 4294967040 }
 0x25d   :  { %360 = vsyncpa [#allocation4], 1 }
 0x25e   :  { %361 = vsyncpa [#allocation7], 1 }
 0x25f   :  { %362 = vsyncpa [#allocation10], 1 }
 0x260   :  { %363 = vsyncpa [#allocation5], 1 }

</bundles_post_ra>
